<compile_context>
chip_gen: v6e
topology: v6e:2x2x1
jax: 0.10.0
libtpu: 0.0.40
codegen_flags: <defaults>
</compile_context>

<pallas_src>
import jax
import jax.numpy as jnp
from jax import lax
from jax.experimental import pallas as pl
from jax.experimental.pallas import tpu as pltpu


def linguo_kernel(emb_ref, wih_ref, b_ref, whh_ref, wdec_ref, bdec_ref, out_ref):
    T = emb_ref.shape[0]
    G = whh_ref.shape[1]          # 4H  (== 128 lanes for H = 32)
    H = G // 4
    R = out_ref.shape[0]          # replicated sublane rows (8) -> full-tile matmuls/stores

    # --- Hoisted input projection: single (T, E) @ (E, 4H) matmul + fused bias ---------
    xw = jnp.dot(emb_ref[...], wih_ref[...],
                 preferred_element_type=jnp.float32) + b_ref[...]          # (T, 4H) f32

    # --- Recurrence: state carried in registers, statically unrolled -------------------
    h = jnp.zeros((R, G), jnp.float32)    # live state in lanes [0, H); rest is dead lanes
    c = jnp.zeros((R, G), jnp.float32)

    for t in range(T):                    # static unroll (T known at trace time)
        x_t = xw[t:t + 1, :]                                              # (1, 4H)
        # rows [H, 4H) of whh_ref are zero => dead lanes of h contribute exactly 0.
        gates = x_t + jnp.dot(h.astype(whh_ref.dtype), whh_ref[...],
                              preferred_element_type=jnp.float32)         # (R, 4H)
        sg = jax.nn.sigmoid(gates)        # full-vreg EUP pass (i, f, o live here)
        th = jnp.tanh(gates)              # full-vreg EUP pass (g lives here)
        # XLU lane rotations align f / g / o onto lanes [0, H); i is already there.
        f_al = pltpu.roll(sg, 3 * H, 1)
        g_al = pltpu.roll(th, 2 * H, 1)
        o_al = pltpu.roll(sg, H, 1)
        c = f_al * c + sg * g_al
        h = o_al * jnp.tanh(c)

    # --- Decision head on zero/-1e30 padded slabs -> lane-dense (8, 128) store ---------
    dec = jnp.dot(h.astype(wdec_ref.dtype), wdec_ref[...],
                  preferred_element_type=jnp.float32) + bdec_ref[...]     # (R, 128)
    m = jnp.max(dec, axis=-1, keepdims=True)
    lse = jnp.log(jnp.sum(jnp.exp(dec - m), axis=-1, keepdims=True)) + m
    out_ref[...] = dec - lse              # padded lanes ~ -1e30 - lse (sliced off outside)


def linguo_forward(sentence_ids, params):
    """sentence_ids: (T,) int32 token indices. Returns (1, 2) log-probabilities."""
    H = params["w_hh"].shape[0]
    G = 4 * H
    OUT_LANES = 128
    R = 8

    # Embedding lookup (gather) stays as JAX glue; matmul operands in bf16.
    emb = params["embedding"][sentence_ids].astype(jnp.bfloat16)          # (T, E)
    w_ih = params["w_ih"].astype(jnp.bfloat16)                            # (E, 4H)
    b = params["b"]                                                       # (1, 4H) f32

    # Zero-pad W_hh rows to 4H so the 128-lane state vreg can be used directly on the MXU.
    whh_pad = (jnp.zeros((G, G), jnp.float32).at[:H, :]
               .set(params["w_hh"]).astype(jnp.bfloat16))                 # (4H, 4H)
    # Decision head padded to a 128-lane slab; padded logits get a -1e30 bias so the
    # in-kernel log_softmax over 128 lanes equals log_softmax over the 2 real classes.
    wdec_pad = (jnp.zeros((G, OUT_LANES), jnp.float32).at[:H, :2]
                .set(params["w_dec"]).astype(jnp.bfloat16))               # (4H, 128)
    bdec_pad = (jnp.full((1, OUT_LANES), -1e30, jnp.float32).at[:, :2]
                .set(params["b_dec"]))                                    # (1, 128)

    vmem = pl.BlockSpec(memory_space=pltpu.MemorySpace.VMEM)
    out = pl.pallas_call(
        linguo_kernel,
        out_shape=jax.ShapeDtypeStruct((R, OUT_LANES), jnp.float32),
        in_specs=[vmem] * 6,
        out_specs=vmem,
    )(emb, w_ih, b, whh_pad, wdec_pad, bdec_pad)
    return out[0:1, 0:2]


def linguo_reference(sentence_ids, params):
    """Pure-JAX reference mirroring the kernel's bf16-weight / f32-accumulate numerics."""
    H = params["w_hh"].shape[0]
    emb = params["embedding"][sentence_ids].astype(jnp.bfloat16)
    w_ih = params["w_ih"].astype(jnp.bfloat16)
    w_hh = params["w_hh"].astype(jnp.bfloat16)
    w_dec = params["w_dec"].astype(jnp.bfloat16)

    xw = jnp.dot(emb, w_ih, preferred_element_type=jnp.float32) + params["b"]
    h = jnp.zeros((1, H), jnp.float32)
    c = jnp.zeros((1, H), jnp.float32)
    for t in range(emb.shape[0]):
        gates = xw[t:t + 1] + jnp.dot(h.astype(jnp.bfloat16), w_hh,
                                      preferred_element_type=jnp.float32)
        i_g = jax.nn.sigmoid(gates[:, 0:H])
        f_g = jax.nn.sigmoid(gates[:, H:2 * H])
        g_g = jnp.tanh(gates[:, 2 * H:3 * H])
        o_g = jax.nn.sigmoid(gates[:, 3 * H:4 * H])
        c = f_g * c + i_g * g_g
        h = o_g * jnp.tanh(c)
    dec = jnp.dot(h.astype(jnp.bfloat16), w_dec,
                  preferred_element_type=jnp.float32) + params["b_dec"]
    return jax.nn.log_softmax(dec, axis=-1)


def init_params(key, vocab_size, embedding_dim, hidden_dim):
    ks = jax.random.split(key, 7)
    E, H = embedding_dim, hidden_dim
    k_lstm = 1.0 / jnp.sqrt(H)
    b_ih = jax.random.uniform(ks[3], (1, 4 * H), jnp.float32, -k_lstm, k_lstm)
    b_hh = jax.random.uniform(ks[4], (1, 4 * H), jnp.float32, -k_lstm, k_lstm)
    params = {
        "embedding": jax.random.normal(ks[0], (vocab_size, E), jnp.float32),
        # PyTorch stores weight_ih as (4H, E); we pre-transpose to (E, 4H). Gate order i,f,g,o.
        "w_ih": jax.random.uniform(ks[1], (E, 4 * H), jnp.float32, -k_lstm, k_lstm),
        "w_hh": jax.random.uniform(ks[2], (H, 4 * H), jnp.float32, -k_lstm, k_lstm),
        "b": b_ih + b_hh,
        "w_dec": jax.random.uniform(ks[5], (H, 2), jnp.float32, -k_lstm, k_lstm),
        "b_dec": jax.random.uniform(ks[6], (1, 2), jnp.float32, -k_lstm, k_lstm),
    }
    return params


if __name__ == "__main__":
    vocab_size = 50
    embedding_dim = 32
    lstm_dim = 32      # unused by the original module (kept for signature parity)
    hidden_dim = 32
    seq_len = 8

    key = jax.random.PRNGKey(0)
    k_param, k_ids = jax.random.split(key)
    params = init_params(k_param, vocab_size, embedding_dim, hidden_dim)
    sentence = jax.random.randint(k_ids, (seq_len,), 0, vocab_size, dtype=jnp.int32)

    out = linguo_forward(sentence, params)
    out = jax.block_until_ready(out)

    assert out.shape == (1, 2)
    # log_softmax sanity: exp(out) should sum to ~1
    assert abs(float(jnp.sum(jnp.exp(out))) - 1.0) < 1e-4
    # correctness vs pure-JAX reference (same bf16/f32 numerics)
    ref = jax.block_until_ready(linguo_reference(sentence, params))
    assert bool(jnp.allclose(out, ref, atol=2e-3, rtol=2e-3)), (out, ref)
    print("KERNEL_OK")
</pallas_src>

<mosaic_0001>
module attributes {stable_mosaic.version = 11 : i64} {
  func.func @linguo_kernel(%arg0: memref<8x32xbf16, #tpu.memory_space<vmem>>, %arg1: memref<32x128xbf16, #tpu.memory_space<vmem>>, %arg2: memref<1x128xf32, #tpu.memory_space<vmem>>, %arg3: memref<128x128xbf16, #tpu.memory_space<vmem>>, %arg4: memref<128x128xbf16, #tpu.memory_space<vmem>>, %arg5: memref<1x128xf32, #tpu.memory_space<vmem>>, %arg6: memref<8x128xf32, #tpu.memory_space<vmem>>) attributes {dimension_semantics = [], scalar_prefetch = 0 : i64, scratch_operands = 0 : i64, tpu.core_type = #tpu.core_type<tc>} {
    %c0 = arith.constant 0 : index
    %c0_0 = arith.constant 0 : index
    %0 = vector.load %arg0[%c0, %c0_0] : memref<8x32xbf16, #tpu.memory_space<vmem>>, vector<8x32xbf16>
    %c0_1 = arith.constant 0 : index
    %c0_2 = arith.constant 0 : index
    %1 = vector.load %arg1[%c0_1, %c0_2] : memref<32x128xbf16, #tpu.memory_space<vmem>>, vector<32x128xbf16>
    %cst = arith.constant dense<0.000000e+00> : vector<8x128xf32>
    %2 = tpu.matmul %0, %1, %cst {dimension_numbers = #tpu.dot_dimension_numbers<[1], [0], [0], [1], [0, 0, 1, 1], [], []>} : vector<8x32xbf16>, vector<32x128xbf16>, vector<8x128xf32> -> vector<8x128xf32>
    %c0_3 = arith.constant 0 : index
    %c0_4 = arith.constant 0 : index
    %3 = vector.load %arg2[%c0_3, %c0_4] : memref<1x128xf32, #tpu.memory_space<vmem>>, vector<1x128xf32>
    %4 = vector.broadcast %3 : vector<1x128xf32> to vector<8x128xf32>
    %5 = arith.addf %2, %4 : vector<8x128xf32>
    %cst_5 = arith.constant 0.000000e+00 : f32
    %6 = vector.broadcast %cst_5 : f32 to vector<8x128xf32>
    %cst_6 = arith.constant 0.000000e+00 : f32
    %7 = vector.broadcast %cst_6 : f32 to vector<8x128xf32>
    %8 = vector.extract_strided_slice %5 {offsets = [0, 0], sizes = [1, 128], strides = [1, 1]} : vector<8x128xf32> to vector<1x128xf32>
    %9 = arith.truncf %6 : vector<8x128xf32> to vector<8x128xbf16>
    %c0_7 = arith.constant 0 : index
    %c0_8 = arith.constant 0 : index
    %10 = vector.load %arg3[%c0_7, %c0_8] : memref<128x128xbf16, #tpu.memory_space<vmem>>, vector<128x128xbf16>
    %cst_9 = arith.constant dense<0.000000e+00> : vector<8x128xf32>
    %11 = tpu.matmul %9, %10, %cst_9 {dimension_numbers = #tpu.dot_dimension_numbers<[1], [0], [0], [1], [0, 0, 1, 1], [], []>} : vector<8x128xbf16>, vector<128x128xbf16>, vector<8x128xf32> -> vector<8x128xf32>
    %12 = vector.broadcast %8 : vector<1x128xf32> to vector<8x128xf32>
    %13 = arith.addf %12, %11 : vector<8x128xf32>
    %14 = arith.negf %13 : vector<8x128xf32>
    %15 = math.exp %14 : vector<8x128xf32>
    %cst_10 = arith.constant 1.000000e+00 : f32
    %16 = vector.broadcast %cst_10 : f32 to vector<8x128xf32>
    %17 = arith.addf %16, %15 : vector<8x128xf32>
    %18 = arith.divf %16, %17 : vector<8x128xf32>
    %19 = math.tanh %13 : vector<8x128xf32>
    %c96_i32 = arith.constant 96 : i32
    %20 = tpu.dynamic_rotate %18 by %c96_i32 dim 1 : vector<8x128xf32>, i32 -> vector<8x128xf32>
    %c64_i32 = arith.constant 64 : i32
    %21 = tpu.dynamic_rotate %19 by %c64_i32 dim 1 : vector<8x128xf32>, i32 -> vector<8x128xf32>
    %c32_i32 = arith.constant 32 : i32
    %22 = tpu.dynamic_rotate %18 by %c32_i32 dim 1 : vector<8x128xf32>, i32 -> vector<8x128xf32>
    %23 = arith.mulf %20, %7 : vector<8x128xf32>
    %24 = arith.mulf %18, %21 : vector<8x128xf32>
    %25 = arith.addf %23, %24 : vector<8x128xf32>
    %26 = math.tanh %25 : vector<8x128xf32>
    %27 = arith.mulf %22, %26 : vector<8x128xf32>
    %28 = vector.extract_strided_slice %5 {offsets = [1, 0], sizes = [1, 128], strides = [1, 1]} : vector<8x128xf32> to vector<1x128xf32>
    %29 = arith.truncf %27 : vector<8x128xf32> to vector<8x128xbf16>
    %c0_11 = arith.constant 0 : index
    %c0_12 = arith.constant 0 : index
    %30 = vector.load %arg3[%c0_11, %c0_12] : memref<128x128xbf16, #tpu.memory_space<vmem>>, vector<128x128xbf16>
    %cst_13 = arith.constant dense<0.000000e+00> : vector<8x128xf32>
    %31 = tpu.matmul %29, %30, %cst_13 {dimension_numbers = #tpu.dot_dimension_numbers<[1], [0], [0], [1], [0, 0, 1, 1], [], []>} : vector<8x128xbf16>, vector<128x128xbf16>, vector<8x128xf32> -> vector<8x128xf32>
    %32 = vector.broadcast %28 : vector<1x128xf32> to vector<8x128xf32>
    %33 = arith.addf %32, %31 : vector<8x128xf32>
    %34 = arith.negf %33 : vector<8x128xf32>
    %35 = math.exp %34 : vector<8x128xf32>
    %cst_14 = arith.constant 1.000000e+00 : f32
    %36 = vector.broadcast %cst_14 : f32 to vector<8x128xf32>
    %37 = arith.addf %36, %35 : vector<8x128xf32>
    %38 = arith.divf %36, %37 : vector<8x128xf32>
    %39 = math.tanh %33 : vector<8x128xf32>
    %c96_i32_15 = arith.constant 96 : i32
    %40 = tpu.dynamic_rotate %38 by %c96_i32_15 dim 1 : vector<8x128xf32>, i32 -> vector<8x128xf32>
    %c64_i32_16 = arith.constant 64 : i32
    %41 = tpu.dynamic_rotate %39 by %c64_i32_16 dim 1 : vector<8x128xf32>, i32 -> vector<8x128xf32>
    %c32_i32_17 = arith.constant 32 : i32
    %42 = tpu.dynamic_rotate %38 by %c32_i32_17 dim 1 : vector<8x128xf32>, i32 -> vector<8x128xf32>
    %43 = arith.mulf %40, %25 : vector<8x128xf32>
    %44 = arith.mulf %38, %41 : vector<8x128xf32>
    %45 = arith.addf %43, %44 : vector<8x128xf32>
    %46 = math.tanh %45 : vector<8x128xf32>
    %47 = arith.mulf %42, %46 : vector<8x128xf32>
    %48 = vector.extract_strided_slice %5 {offsets = [2, 0], sizes = [1, 128], strides = [1, 1]} : vector<8x128xf32> to vector<1x128xf32>
    %49 = arith.truncf %47 : vector<8x128xf32> to vector<8x128xbf16>
    %c0_18 = arith.constant 0 : index
    %c0_19 = arith.constant 0 : index
    %50 = vector.load %arg3[%c0_18, %c0_19] : memref<128x128xbf16, #tpu.memory_space<vmem>>, vector<128x128xbf16>
    %cst_20 = arith.constant dense<0.000000e+00> : vector<8x128xf32>
    %51 = tpu.matmul %49, %50, %cst_20 {dimension_numbers = #tpu.dot_dimension_numbers<[1], [0], [0], [1], [0, 0, 1, 1], [], []>} : vector<8x128xbf16>, vector<128x128xbf16>, vector<8x128xf32> -> vector<8x128xf32>
    %52 = vector.broadcast %48 : vector<1x128xf32> to vector<8x128xf32>
    %53 = arith.addf %52, %51 : vector<8x128xf32>
    %54 = arith.negf %53 : vector<8x128xf32>
    %55 = math.exp %54 : vector<8x128xf32>
    %cst_21 = arith.constant 1.000000e+00 : f32
    %56 = vector.broadcast %cst_21 : f32 to vector<8x128xf32>
    %57 = arith.addf %56, %55 : vector<8x128xf32>
    %58 = arith.divf %56, %57 : vector<8x128xf32>
    %59 = math.tanh %53 : vector<8x128xf32>
    %c96_i32_22 = arith.constant 96 : i32
    %60 = tpu.dynamic_rotate %58 by %c96_i32_22 dim 1 : vector<8x128xf32>, i32 -> vector<8x128xf32>
    %c64_i32_23 = arith.constant 64 : i32
    %61 = tpu.dynamic_rotate %59 by %c64_i32_23 dim 1 : vector<8x128xf32>, i32 -> vector<8x128xf32>
    %c32_i32_24 = arith.constant 32 : i32
    %62 = tpu.dynamic_rotate %58 by %c32_i32_24 dim 1 : vector<8x128xf32>, i32 -> vector<8x128xf32>
    %63 = arith.mulf %60, %45 : vector<8x128xf32>
    %64 = arith.mulf %58, %61 : vector<8x128xf32>
    %65 = arith.addf %63, %64 : vector<8x128xf32>
    %66 = math.tanh %65 : vector<8x128xf32>
    %67 = arith.mulf %62, %66 : vector<8x128xf32>
    %68 = vector.extract_strided_slice %5 {offsets = [3, 0], sizes = [1, 128], strides = [1, 1]} : vector<8x128xf32> to vector<1x128xf32>
    %69 = arith.truncf %67 : vector<8x128xf32> to vector<8x128xbf16>
    %c0_25 = arith.constant 0 : index
    %c0_26 = arith.constant 0 : index
    %70 = vector.load %arg3[%c0_25, %c0_26] : memref<128x128xbf16, #tpu.memory_space<vmem>>, vector<128x128xbf16>
    %cst_27 = arith.constant dense<0.000000e+00> : vector<8x128xf32>
    %71 = tpu.matmul %69, %70, %cst_27 {dimension_numbers = #tpu.dot_dimension_numbers<[1], [0], [0], [1], [0, 0, 1, 1], [], []>} : vector<8x128xbf16>, vector<128x128xbf16>, vector<8x128xf32> -> vector<8x128xf32>
    %72 = vector.broadcast %68 : vector<1x128xf32> to vector<8x128xf32>
    %73 = arith.addf %72, %71 : vector<8x128xf32>
    %74 = arith.negf %73 : vector<8x128xf32>
    %75 = math.exp %74 : vector<8x128xf32>
    %cst_28 = arith.constant 1.000000e+00 : f32
    %76 = vector.broadcast %cst_28 : f32 to vector<8x128xf32>
    %77 = arith.addf %76, %75 : vector<8x128xf32>
    %78 = arith.divf %76, %77 : vector<8x128xf32>
    %79 = math.tanh %73 : vector<8x128xf32>
    %c96_i32_29 = arith.constant 96 : i32
    %80 = tpu.dynamic_rotate %78 by %c96_i32_29 dim 1 : vector<8x128xf32>, i32 -> vector<8x128xf32>
    %c64_i32_30 = arith.constant 64 : i32
    %81 = tpu.dynamic_rotate %79 by %c64_i32_30 dim 1 : vector<8x128xf32>, i32 -> vector<8x128xf32>
    %c32_i32_31 = arith.constant 32 : i32
    %82 = tpu.dynamic_rotate %78 by %c32_i32_31 dim 1 : vector<8x128xf32>, i32 -> vector<8x128xf32>
    %83 = arith.mulf %80, %65 : vector<8x128xf32>
    %84 = arith.mulf %78, %81 : vector<8x128xf32>
    %85 = arith.addf %83, %84 : vector<8x128xf32>
    %86 = math.tanh %85 : vector<8x128xf32>
    %87 = arith.mulf %82, %86 : vector<8x128xf32>
    %88 = vector.extract_strided_slice %5 {offsets = [4, 0], sizes = [1, 128], strides = [1, 1]} : vector<8x128xf32> to vector<1x128xf32>
    %89 = arith.truncf %87 : vector<8x128xf32> to vector<8x128xbf16>
    %c0_32 = arith.constant 0 : index
    %c0_33 = arith.constant 0 : index
    %90 = vector.load %arg3[%c0_32, %c0_33] : memref<128x128xbf16, #tpu.memory_space<vmem>>, vector<128x128xbf16>
    %cst_34 = arith.constant dense<0.000000e+00> : vector<8x128xf32>
    %91 = tpu.matmul %89, %90, %cst_34 {dimension_numbers = #tpu.dot_dimension_numbers<[1], [0], [0], [1], [0, 0, 1, 1], [], []>} : vector<8x128xbf16>, vector<128x128xbf16>, vector<8x128xf32> -> vector<8x128xf32>
    %92 = vector.broadcast %88 : vector<1x128xf32> to vector<8x128xf32>
    %93 = arith.addf %92, %91 : vector<8x128xf32>
    %94 = arith.negf %93 : vector<8x128xf32>
    %95 = math.exp %94 : vector<8x128xf32>
    %cst_35 = arith.constant 1.000000e+00 : f32
    %96 = vector.broadcast %cst_35 : f32 to vector<8x128xf32>
    %97 = arith.addf %96, %95 : vector<8x128xf32>
    %98 = arith.divf %96, %97 : vector<8x128xf32>
    %99 = math.tanh %93 : vector<8x128xf32>
    %c96_i32_36 = arith.constant 96 : i32
    %100 = tpu.dynamic_rotate %98 by %c96_i32_36 dim 1 : vector<8x128xf32>, i32 -> vector<8x128xf32>
    %c64_i32_37 = arith.constant 64 : i32
    %101 = tpu.dynamic_rotate %99 by %c64_i32_37 dim 1 : vector<8x128xf32>, i32 -> vector<8x128xf32>
    %c32_i32_38 = arith.constant 32 : i32
    %102 = tpu.dynamic_rotate %98 by %c32_i32_38 dim 1 : vector<8x128xf32>, i32 -> vector<8x128xf32>
    %103 = arith.mulf %100, %85 : vector<8x128xf32>
    %104 = arith.mulf %98, %101 : vector<8x128xf32>
    %105 = arith.addf %103, %104 : vector<8x128xf32>
    %106 = math.tanh %105 : vector<8x128xf32>
    %107 = arith.mulf %102, %106 : vector<8x128xf32>
    %108 = vector.extract_strided_slice %5 {offsets = [5, 0], sizes = [1, 128], strides = [1, 1]} : vector<8x128xf32> to vector<1x128xf32>
    %109 = arith.truncf %107 : vector<8x128xf32> to vector<8x128xbf16>
    %c0_39 = arith.constant 0 : index
    %c0_40 = arith.constant 0 : index
    %110 = vector.load %arg3[%c0_39, %c0_40] : memref<128x128xbf16, #tpu.memory_space<vmem>>, vector<128x128xbf16>
    %cst_41 = arith.constant dense<0.000000e+00> : vector<8x128xf32>
    %111 = tpu.matmul %109, %110, %cst_41 {dimension_numbers = #tpu.dot_dimension_numbers<[1], [0], [0], [1], [0, 0, 1, 1], [], []>} : vector<8x128xbf16>, vector<128x128xbf16>, vector<8x128xf32> -> vector<8x128xf32>
    %112 = vector.broadcast %108 : vector<1x128xf32> to vector<8x128xf32>
    %113 = arith.addf %112, %111 : vector<8x128xf32>
    %114 = arith.negf %113 : vector<8x128xf32>
    %115 = math.exp %114 : vector<8x128xf32>
    %cst_42 = arith.constant 1.000000e+00 : f32
    %116 = vector.broadcast %cst_42 : f32 to vector<8x128xf32>
    %117 = arith.addf %116, %115 : vector<8x128xf32>
    %118 = arith.divf %116, %117 : vector<8x128xf32>
    %119 = math.tanh %113 : vector<8x128xf32>
    %c96_i32_43 = arith.constant 96 : i32
    %120 = tpu.dynamic_rotate %118 by %c96_i32_43 dim 1 : vector<8x128xf32>, i32 -> vector<8x128xf32>
    %c64_i32_44 = arith.constant 64 : i32
    %121 = tpu.dynamic_rotate %119 by %c64_i32_44 dim 1 : vector<8x128xf32>, i32 -> vector<8x128xf32>
    %c32_i32_45 = arith.constant 32 : i32
    %122 = tpu.dynamic_rotate %118 by %c32_i32_45 dim 1 : vector<8x128xf32>, i32 -> vector<8x128xf32>
    %123 = arith.mulf %120, %105 : vector<8x128xf32>
    %124 = arith.mulf %118, %121 : vector<8x128xf32>
    %125 = arith.addf %123, %124 : vector<8x128xf32>
    %126 = math.tanh %125 : vector<8x128xf32>
    %127 = arith.mulf %122, %126 : vector<8x128xf32>
    %128 = vector.extract_strided_slice %5 {offsets = [6, 0], sizes = [1, 128], strides = [1, 1]} : vector<8x128xf32> to vector<1x128xf32>
    %129 = arith.truncf %127 : vector<8x128xf32> to vector<8x128xbf16>
    %c0_46 = arith.constant 0 : index
    %c0_47 = arith.constant 0 : index
    %130 = vector.load %arg3[%c0_46, %c0_47] : memref<128x128xbf16, #tpu.memory_space<vmem>>, vector<128x128xbf16>
    %cst_48 = arith.constant dense<0.000000e+00> : vector<8x128xf32>
    %131 = tpu.matmul %129, %130, %cst_48 {dimension_numbers = #tpu.dot_dimension_numbers<[1], [0], [0], [1], [0, 0, 1, 1], [], []>} : vector<8x128xbf16>, vector<128x128xbf16>, vector<8x128xf32> -> vector<8x128xf32>
    %132 = vector.broadcast %128 : vector<1x128xf32> to vector<8x128xf32>
    %133 = arith.addf %132, %131 : vector<8x128xf32>
    %134 = arith.negf %133 : vector<8x128xf32>
    %135 = math.exp %134 : vector<8x128xf32>
    %cst_49 = arith.constant 1.000000e+00 : f32
    %136 = vector.broadcast %cst_49 : f32 to vector<8x128xf32>
    %137 = arith.addf %136, %135 : vector<8x128xf32>
    %138 = arith.divf %136, %137 : vector<8x128xf32>
    %139 = math.tanh %133 : vector<8x128xf32>
    %c96_i32_50 = arith.constant 96 : i32
    %140 = tpu.dynamic_rotate %138 by %c96_i32_50 dim 1 : vector<8x128xf32>, i32 -> vector<8x128xf32>
    %c64_i32_51 = arith.constant 64 : i32
    %141 = tpu.dynamic_rotate %139 by %c64_i32_51 dim 1 : vector<8x128xf32>, i32 -> vector<8x128xf32>
    %c32_i32_52 = arith.constant 32 : i32
    %142 = tpu.dynamic_rotate %138 by %c32_i32_52 dim 1 : vector<8x128xf32>, i32 -> vector<8x128xf32>
    %143 = arith.mulf %140, %125 : vector<8x128xf32>
    %144 = arith.mulf %138, %141 : vector<8x128xf32>
    %145 = arith.addf %143, %144 : vector<8x128xf32>
    %146 = math.tanh %145 : vector<8x128xf32>
    %147 = arith.mulf %142, %146 : vector<8x128xf32>
    %148 = vector.extract_strided_slice %5 {offsets = [7, 0], sizes = [1, 128], strides = [1, 1]} : vector<8x128xf32> to vector<1x128xf32>
    %149 = arith.truncf %147 : vector<8x128xf32> to vector<8x128xbf16>
    %c0_53 = arith.constant 0 : index
    %c0_54 = arith.constant 0 : index
    %150 = vector.load %arg3[%c0_53, %c0_54] : memref<128x128xbf16, #tpu.memory_space<vmem>>, vector<128x128xbf16>
    %cst_55 = arith.constant dense<0.000000e+00> : vector<8x128xf32>
    %151 = tpu.matmul %149, %150, %cst_55 {dimension_numbers = #tpu.dot_dimension_numbers<[1], [0], [0], [1], [0, 0, 1, 1], [], []>} : vector<8x128xbf16>, vector<128x128xbf16>, vector<8x128xf32> -> vector<8x128xf32>
    %152 = vector.broadcast %148 : vector<1x128xf32> to vector<8x128xf32>
    %153 = arith.addf %152, %151 : vector<8x128xf32>
    %154 = arith.negf %153 : vector<8x128xf32>
    %155 = math.exp %154 : vector<8x128xf32>
    %cst_56 = arith.constant 1.000000e+00 : f32
    %156 = vector.broadcast %cst_56 : f32 to vector<8x128xf32>
    %157 = arith.addf %156, %155 : vector<8x128xf32>
    %158 = arith.divf %156, %157 : vector<8x128xf32>
    %159 = math.tanh %153 : vector<8x128xf32>
    %c96_i32_57 = arith.constant 96 : i32
    %160 = tpu.dynamic_rotate %158 by %c96_i32_57 dim 1 : vector<8x128xf32>, i32 -> vector<8x128xf32>
    %c64_i32_58 = arith.constant 64 : i32
    %161 = tpu.dynamic_rotate %159 by %c64_i32_58 dim 1 : vector<8x128xf32>, i32 -> vector<8x128xf32>
    %c32_i32_59 = arith.constant 32 : i32
    %162 = tpu.dynamic_rotate %158 by %c32_i32_59 dim 1 : vector<8x128xf32>, i32 -> vector<8x128xf32>
    %163 = arith.mulf %160, %145 : vector<8x128xf32>
    %164 = arith.mulf %158, %161 : vector<8x128xf32>
    %165 = arith.addf %163, %164 : vector<8x128xf32>
    %166 = math.tanh %165 : vector<8x128xf32>
    %167 = arith.mulf %162, %166 : vector<8x128xf32>
    %168 = arith.truncf %167 : vector<8x128xf32> to vector<8x128xbf16>
    %c0_60 = arith.constant 0 : index
    %c0_61 = arith.constant 0 : index
    %169 = vector.load %arg4[%c0_60, %c0_61] : memref<128x128xbf16, #tpu.memory_space<vmem>>, vector<128x128xbf16>
    %cst_62 = arith.constant dense<0.000000e+00> : vector<8x128xf32>
    %170 = tpu.matmul %168, %169, %cst_62 {dimension_numbers = #tpu.dot_dimension_numbers<[1], [0], [0], [1], [0, 0, 1, 1], [], []>} : vector<8x128xbf16>, vector<128x128xbf16>, vector<8x128xf32> -> vector<8x128xf32>
    %c0_63 = arith.constant 0 : index
    %c0_64 = arith.constant 0 : index
    %171 = vector.load %arg5[%c0_63, %c0_64] : memref<1x128xf32, #tpu.memory_space<vmem>>, vector<1x128xf32>
    %172 = vector.broadcast %171 : vector<1x128xf32> to vector<8x128xf32>
    %173 = arith.addf %170, %172 : vector<8x128xf32>
    %cst_65 = arith.constant dense<0xFF800000> : vector<8xf32>
    %174 = vector.multi_reduction <maximumf>, %173, %cst_65 [1] : vector<8x128xf32> to vector<8xf32>
    %175 = vector.shape_cast %174 : vector<8xf32> to vector<8x1xf32>
    %176 = vector.broadcast %175 : vector<8x1xf32> to vector<8x128xf32>
    %177 = arith.subf %173, %176 : vector<8x128xf32>
    %178 = math.exp %177 : vector<8x128xf32>
    %cst_66 = arith.constant dense<0.000000e+00> : vector<8xf32>
    %179 = vector.multi_reduction <add>, %178, %cst_66 [1] : vector<8x128xf32> to vector<8xf32>
    %180 = vector.shape_cast %179 : vector<8xf32> to vector<8x1xf32>
    %181 = math.log %180 : vector<8x1xf32>
    %182 = arith.addf %181, %175 : vector<8x1xf32>
    %183 = vector.broadcast %182 : vector<8x1xf32> to vector<8x128xf32>
    %184 = arith.subf %173, %183 : vector<8x128xf32>
    %c0_67 = arith.constant 0 : index
    %c0_68 = arith.constant 0 : index
    %185 = vector.load %arg6[%c0_67, %c0_68] : memref<8x128xf32, #tpu.memory_space<vmem>>, vector<8x128xf32>
    tpu.vector_store %arg6[%c0_67, %c0_68], %184 {strides = array<i32>} : memref<8x128xf32, #tpu.memory_space<vmem>>, vector<8x128xf32>,
    return
  }
}

</mosaic_0001>

<bundles_post_ra>
// kernel: tpu_custom_call.1
= control target key start
LH: loop header
LB: loop body
LE: loop exit
PB: predicated region body
PF: predicated region fallthrough
CT: control target
= control target key end

     0   :  { %11 = vsyncpa [#allocation3], 0  ;;  %s1662_s0 = inlined_call_operand.hbm [shape: bf16[8,32], index: 0, kind: input, shape index: {}]   ;;  %s1663_s1 = inlined_call_operand.hbm [shape: bf16[32,128], index: 1, kind: input, shape index: {}]   ;;  %s1664_s2 = inlined_call_operand.vmem [shape: f32[1,128], index: 2, kind: input, shape index: {}]   ;;  %s1665_s3 = inlined_call_operand.hbm [shape: bf16[128,128], index: 3, kind: input, shape index: {}]   ;;  %s1666_s4 = inlined_call_operand.hbm [shape: bf16[128,128], index: 4, kind: input, shape index: {}]   ;;  %s1667_s5 = inlined_call_operand.vmem [shape: f32[1,128], index: 5, kind: input, shape index: {}]   ;;  %s1668_s6 = inlined_call_operand.hbm [shape: f32[8,128], index: 6, kind: output, shape index: {}]  }
   0x1   :  { %12 = vsyncpa [#allocation6], 0 }
   0x2   :  { %13 = vsyncpa [#allocation9], 0 }
   0x3   :  { %14 = vsyncpa [#allocation4], 0  ;;  %s1369_s21 = smov [#allocation5]  }
   0x4   :  { %s30_s22 = sshll.u32 %s1369_s21, 4  ;;  %s31_s22 = int_to_ptr.vmem [resolvable:$true] %s30_s22 }
   0x5   :  { %s1269_s23 = scalar_lea.vmem %s31_s22, 256  ;;  %p1274_p1 = scmp.lt.s32.totalorder %s31_s22, %s31_s22 }
   0x6   :  { %p1270_p0 = scmp.ne.s32.totalorder %s31_s22, %s1269_s23  ;;  %p1275_p2 = scmp.lt.s32.totalorder %s1269_s23, %s1269_s23 }
   0x8   :  { %p1276_p3 = por %p1275_p2, %p1274_p1 }
   0xa   :  { %p1277_p4 = pnand %p1276_p3, %p1270_p0 }
   0xc   :  { %1280 = shalt.err (!%p1277_p4)
}
   0xd   :  { %s1370_s24 = smov 64   ;;  %s1371_s25 = smov 4  }
   0xe   :  { %36 = dma.hbm_to_vmem [thread:$0]  %s1663_s1, 256, %s31_s22, [#allocation6], %s1370_s24, %s1370_s24, %s1371_s25  }
   0xf   :  { %s1372_s28 = smov [#allocation2]   ;;  %s1373_s30 = smov [#allocation7]  }
  0x10   :  { %s21_s29 = sshll.u32 %s1372_s28, 4  ;;  %s44_s7 = sshll.u32 %s1373_s30, 4  ;;  %s22_s29 = int_to_ptr.vmem [resolvable:$true] %s21_s29  ;;  %s45_s7 = int_to_ptr.vmem [resolvable:$true] %s44_s7 }
  0x11   :  { %s1289_s8 = scalar_lea.vmem %s22_s29, 64  ;;  %p1294_p6 = scmp.lt.s32.totalorder %s22_s29, %s22_s29 }
  0x12   :  { %p1290_p5 = scmp.ne.s32.totalorder %s22_s29, %s1289_s8  ;;  %p1295_p7 = scmp.lt.s32.totalorder %s1289_s8, %s1289_s8 }
  0x14   :  { %p1296_p8 = por %p1295_p7, %p1294_p6 }
  0x16   :  { %p1297_p9 = pnand %p1296_p8, %p1290_p5 }
  0x18   :  { %1300 = shalt.err (!%p1297_p9)
}
  0x19   :  { %24 = dma.hbm_to_vmem [thread:$0]  %s1662_s0, 64, %s22_s29, [#allocation3]  }
  0x1a   :  { %s1309_s11 = scalar_lea.vmem %s45_s7, 1024  ;;  %p1314_p11 = scmp.lt.s32.totalorder %s45_s7, %s45_s7 }
  0x1b   :  { %p1310_p10 = scmp.ne.s32.totalorder %s45_s7, %s1309_s11  ;;  %p1315_p12 = scmp.lt.s32.totalorder %s1309_s11, %s1309_s11 }
  0x1d   :  { %p1316_p13 = por %p1315_p12, %p1314_p11 }
  0x1f   :  { %p1317_p0 = pnand %p1316_p13, %p1310_p10 }
  0x21   :  { %1320 = shalt.err (!%p1317_p0)
}
  0x22   :  { %50 = dma.hbm_to_vmem [thread:$0]  %s1665_s3, 1024, %s45_s7, [#allocation6], %s1370_s24, %s1370_s24, %s1371_s25  }
  0x23   :  { %s1374_s13 = smov [#allocation8]  }
  0x24   :  { %s56_s14 = sshll.u32 %s1374_s13, 4  ;;  %s57_s14 = int_to_ptr.vmem [resolvable:$true] %s56_s14 }
  0x25   :  { %s1329_s15 = scalar_lea.vmem %s57_s14, 1024  ;;  %p1334_p2 = scmp.lt.s32.totalorder %s57_s14, %s57_s14 }
  0x26   :  { %p1330_p1 = scmp.ne.s32.totalorder %s57_s14, %s1329_s15  ;;  %p1335_p3 = scmp.lt.s32.totalorder %s1329_s15, %s1329_s15 }
  0x28   :  { %p1336_p4 = por %p1335_p3, %p1334_p2 }
  0x2a   :  { %p1337_p5 = pnand %p1336_p4, %p1330_p1 }
  0x2c   :  { %1340 = shalt.err (!%p1337_p5)
}
  0x2d   :  { %62 = dma.hbm_to_vmem [thread:$0]  %s1666_s4, 1024, %s57_s14, [#allocation9], %s1370_s24, %s1370_s24, %s1371_s25  }
  0x2e   :  { %1361 = dma.done.wait [#allocation3], 64  }
  0x2f   :  { %1362 = vsyncadd [#allocation3], 4294967232 }
  0x30   :  { %1363 = dma.done.wait [#allocation6], 1280  }
  0x31   :  { %1364 = vsyncadd [#allocation6], 4294966016 }
  0x32   :  { %1365 = dma.done.wait [#allocation9], 1024  }
  0x33   :  { %1366 = vsyncadd [#allocation9], 4294966272  ;;  %v1375_v0 = vmov 0.0   ;;  %vm1376_vm0 = vmmov 0   ;;  %v1443_v1 = vld [vmem:[#allocation7 + $0x38] sm:$0xff]   ;;  %v1446_v2 = vld [vmem:[#allocation7 + $0x30] sm:$0xff]   ;;  %v250_v13 = vlaneseq }
  0x34   :  { %983 = vmatprep.subr.bf16.mxu1 %v1375_v0  ;;  %975 = vmatprep.subr.bf16.mxu0 %v1375_v0  ;;  %v1179_v3 = vld [vmem:[#allocation5 + $0x8] sm:$0xff]   ;;  %v1449_v4 = vld [vmem:[#allocation7 + $0x28] sm:$0xff]   ;;  %v1181_v5 = vld [vmem:[#allocation5] sm:$0xff]   ;;  %vm102_vm1 = vcmask 261120   ;;  %v1377_v12 = vmov 0   ;;  %s1379_s17 = smov 96  }
  0x35   :  { %979 = vmatprep.mubr.msk.bf16.mxu0 %vm1376_vm0, %v1375_v0  ;;  %999 = vmatprep.mubr.msk.bf16.mxu1 %vm1376_vm0, %v1375_v0  ;;  %v1455_v6 = vld [vmem:[#allocation7 + $0x20] sm:$0xff]   ;;  %v78_v7 = vld [vmem:[#allocation2] sm:$0xf]  ;;  %v1459_v8 = vld [vmem:[#allocation7 + $0x18] sm:$0xff]   ;;  %v251_v14 = vshrl.u32 %v250_v13, 7  ;;  %s1380_s20 = smov [#allocation10]  }
  0x36   :  { %984 = vmatpush3.bf16.msra.mxu1 %v1443_v1  ;;  %976 = vmatpush3.bf16.msra.mxu0 %v1179_v3  ;;  %v1468_v9 = vld [vmem:[#allocation7 + $0x10] sm:$0xff]   ;;  %v1474_v10 = vld [vmem:[#allocation7 + $0x8] sm:$0xff]   ;;  %v1480_v11 = vld [vmem:[#allocation7] sm:$0xff]   ;;  %s851_s21 = sshll.u32 %s1380_s20, 4  ;;  %s852_s21 = int_to_ptr.vmem [resolvable:$true] %s851_s21 }
  0x37   :  { %985 = vmatprep.subr.bf16.mxu1 %v1375_v0  ;;  %977 = vmatprep.subr.bf16.mxu0 %v1375_v0  ;;  %v862_v15 = vld [vmem:[%s1664_s2] ss:$0 sm:$0xff]  ;;  %v316_v16 = vsub.s32 1, %v251_v14  ;;  %v380_v17 = vsub.s32 2, %v251_v14  ;;  %v444_v18 = vsub.s32 3, %v251_v14  ;;  %v508_v20 = vsub.s32 4, %v251_v14  ;;  %p1346_p7 = scmp.lt.s32.totalorder %s852_s21, %s852_s21 }
  0x38   :  { %v572_v21 = vsub.s32 5, %v251_v14  ;;  %v636_v22 = vsub.s32 6, %v251_v14  ;;  %v700_v23 = vsub.s32 7, %v251_v14  ;;  %v252_v35 = vsub.s32 0, %v251_v14  ;;  %s1378_s2 = smov 32  }
  0x3a   :  { %986 = vmatpush3.bf16.msra.mxu1 %v1446_v2  ;;  %978 = vmatpush3.bf16.msra.mxu0 %v1181_v5 }
  0x3b   :  { %987 = vmatprep.subr.bf16.mxu1 %v1375_v0  ;;  %1003 = vmatprep.subr.bf16.mxu0 %v1375_v0 }
  0x3d   :  { %980 = vmatmul.mubr.msk.bf16.vlgmr.msra.gmra.mxu0 %vm102_vm1, %v78_v7 }
  0x3e   :  { %988 = vmatpush3.bf16.msra.mxu1 %v1449_v4  ;;  %1004 = vmatpush3.bf16.msra.mxu0 %v1443_v1 }
  0x3f   :  { %989 = vmatprep.subr.bf16.mxu1 %v1375_v0  ;;  %1005 = vmatprep.subr.bf16.mxu0 %v1375_v0 }
  0x40   :  { %1019 = vmatprep.mubr.msk.bf16.mxu0 %vm1376_vm0, %v1375_v0 }
  0x42   :  { %990 = vmatpush3.bf16.msra.mxu1 %v1455_v6  ;;  %1006 = vmatpush3.bf16.msra.mxu0 %v1446_v2 }
  0x43   :  { %991 = vmatprep.subr.bf16.mxu1 %v1375_v0  ;;  %1007 = vmatprep.subr.bf16.mxu0 %v1375_v0 }
  0x46   :  { %992 = vmatpush3.bf16.msra.mxu1 %v1459_v8  ;;  %1008 = vmatpush3.bf16.msra.mxu0 %v1449_v4 }
  0x47   :  { %993 = vmatprep.subr.bf16.mxu1 %v1375_v0  ;;  %1009 = vmatprep.subr.bf16.mxu0 %v1375_v0 }
  0x4a   :  { %994 = vmatpush3.bf16.msra.mxu1 %v1468_v9  ;;  %1010 = vmatpush3.bf16.msra.mxu0 %v1455_v6 }
  0x4b   :  { %995 = vmatprep.subr.bf16.mxu1 %v1375_v0  ;;  %1011 = vmatprep.subr.bf16.mxu0 %v1375_v0 }
  0x4e   :  { %996 = vmatpush3.bf16.msra.mxu1 %v1474_v10  ;;  %1012 = vmatpush3.bf16.msra.mxu0 %v1459_v8 }
  0x4f   :  { %997 = vmatprep.subr.bf16.mxu1 %v1375_v0  ;;  %1013 = vmatprep.subr.bf16.mxu0 %v1375_v0 }
  0x52   :  { %998 = vmatpush3.bf16.msra.mxu1 %v1480_v11  ;;  %1014 = vmatpush3.bf16.msra.mxu0 %v1468_v9 }
  0x53   :  { %1023 = vmatprep.subr.bf16.mxu1 %v1375_v0  ;;  %1015 = vmatprep.subr.bf16.mxu0 %v1375_v0 }
  0x55   :  { %1000 = vmatmul.mubr.bf16.vlgmr.msra.gmra.mxu1 %v1377_v12 }
  0x56   :  { %1024 = vmatpush3.bf16.msra.mxu1 %v1443_v1  ;;  %1039 = vmatprep.mubr.msk.bf16.mxu1 %vm1376_vm0, %v1375_v0 }
  0x57   :  { %1025 = vmatprep.subr.bf16.mxu1 %v1375_v0  ;;  %1016 = vmatpush3.bf16.msra.mxu0 %v1474_v10 }
  0x58   :  { %1017 = vmatprep.subr.bf16.mxu0 %v1375_v0 }
  0x5a   :  { %1026 = vmatpush3.bf16.msra.mxu1 %v1446_v2 }
  0x5b   :  { %1027 = vmatprep.subr.bf16.mxu1 %v1375_v0  ;;  %1018 = vmatpush3.bf16.msra.mxu0 %v1480_v11 }
  0x5c   :  { %1043 = vmatprep.subr.bf16.mxu0 %v1375_v0 }
  0x5e   :  { %1028 = vmatpush3.bf16.msra.mxu1 %v1449_v4 }
  0x5f   :  { %1029 = vmatprep.subr.bf16.mxu1 %v1375_v0 }
  0x62   :  { %1030 = vmatpush3.bf16.msra.mxu1 %v1455_v6 }
  0x63   :  { %1031 = vmatprep.subr.bf16.mxu1 %v1375_v0 }
  0x66   :  { %1032 = vmatpush3.bf16.msra.mxu1 %v1459_v8 }
  0x67   :  { %1033 = vmatprep.subr.bf16.mxu1 %v1375_v0 }
  0x6a   :  { %1034 = vmatpush3.bf16.msra.mxu1 %v1468_v9 }
  0x6b   :  { %1035 = vmatprep.subr.bf16.mxu1 %v1375_v0 }
  0x6e   :  { %1036 = vmatpush3.bf16.msra.mxu1 %v1474_v10 }
  0x6f   :  { %1037 = vmatprep.subr.bf16.mxu1 %v1375_v0 }
  0x72   :  { %1038 = vmatpush3.bf16.msra.mxu1 %v1480_v11 }
  0x73   :  { %1063 = vmatprep.subr.bf16.mxu1 %v1375_v0 }
  0xfd   :  { %v140_v19 = vpop.f32.mrf.mxu0 }
  0xfe   :  { %v141_v24 = vadd.f32 %v862_v15, %v140_v19 }
  0xff   :  { %v981_v25 = vpop.f32.mrf.mxu0 }
 0x100   :  { %v317_v26 = vrot.slane %v141_v24, %v316_v16  ;;  %v1516_v27 = vrot.slane %v141_v24, %v380_v17  ;;  %v1518_v28 = vrot.slane %v141_v24, %v444_v18  ;;  %v1520_v30 = vrot.slane %v141_v24, %v508_v20 }
 0x101   :  { %v143_v29 = vpop.f32.mrf.mxu0  ;;  %v1522_v31 = vrot.slane %v141_v24, %v572_v21  ;;  %v1524_v32 = vrot.slane %v141_v24, %v636_v22  ;;  %v1526_v33 = vrot.slane %v141_v24, %v700_v23  ;;  %v253_v36 = vrot.slane %v141_v24, %v252_v35 }
 0x103   :  { %v982_v34 = vpop.f32.mrf.mxu0 }
 0x115   :  { %v244_v37 = vpop.f32.mrf.mxu1 }
 0x116   :  { %v254_v38 = vadd.f32 %v253_v36, %v244_v37 }
 0x117   :  { %v1001_v39 = vpop.f32.mrf.mxu1 }
 0x118   :  { %v874_v40 = vmul.f32 -1.442695, %v254_v38 }
 0x119   :  { %v247_v41 = vpop.f32.mrf.mxu1 }
 0x11a   :  { %1193 = vpow2.f32 %v874_v40 }
 0x11b   :  { %v1002_v42 = vpop.f32.mrf.mxu1 }
 0x127   :  { %v1194_v43 = vpop.eup %1193 }
 0x128   :  { %v258_v44 = vadd.f32 1.0, %v1194_v43 }
 0x12a   :  { %1195 = vrcp.f32 %v258_v44 }
 0x12b   :  { %1197 = vtanh.f32 %v254_v38 }
 0x137   :  { %v1196_v45 = vpop.eup %1195 }
 0x138   :  { %266 = vrot.lane.b32.xlu1 %v1196_v45, %s1378_s2  ;;  %262 = vrot.lane.b32.xlu0 %v1196_v45, %s1379_s17  ;;  %v1198_v46 = vpop.eup %1197 }
 0x13c   :  { %264 = vrot.lane.b32.xlu0 %v1198_v46, %s1370_s24 }
 0x1aa   :  { %v263_v47 = vpop.permute.xlu0 %262  ;;  %v267_v53 = vpop.permute.xlu1 %266 }
 0x1ab   :  { %v268_v49 = vmul.f32 0.0, %v263_v47 }
 0x1ae   :  { %v265_v48 = vpop.permute.xlu0 %264 }
 0x1af   :  { %v269_v50 = vmul.f32 %v1196_v45, %v265_v48 }
 0x1b1   :  { %v270_v51 = vadd.f32 %v269_v50, %v268_v49 }
 0x1b3   :  { %1199 = vtanh.f32 %v270_v51 }
 0x1c0   :  { %v1200_v52 = vpop.eup %1199 }
 0x1c1   :  { %v272_v54 = vmul.f32 %v1200_v52, %v267_v53 }
 0x1c3   :  { %v273_v55 = vpack.c.bf16 %v272_v54, %v272_v54 }
 0x1c5   :  { %1020 = vmatmul.mubr.bf16.vlgmr.msra.gmra.mxu0 %v273_v55 }
 0x1c6   :  { %1044 = vmatpush3.bf16.msra.mxu0 %v1443_v1  ;;  %1059 = vmatprep.mubr.msk.bf16.mxu0 %vm1376_vm0, %v1375_v0 }
 0x1c7   :  { %1045 = vmatprep.subr.bf16.mxu0 %v1375_v0 }
 0x1ca   :  { %1046 = vmatpush3.bf16.msra.mxu0 %v1446_v2 }
 0x1cb   :  { %1047 = vmatprep.subr.bf16.mxu0 %v1375_v0 }
 0x1ce   :  { %1048 = vmatpush3.bf16.msra.mxu0 %v1449_v4 }
 0x1cf   :  { %1049 = vmatprep.subr.bf16.mxu0 %v1375_v0 }
 0x1d2   :  { %1050 = vmatpush3.bf16.msra.mxu0 %v1455_v6 }
 0x1d3   :  { %1051 = vmatprep.subr.bf16.mxu0 %v1375_v0 }
 0x1d6   :  { %1052 = vmatpush3.bf16.msra.mxu0 %v1459_v8 }
 0x1d7   :  { %1053 = vmatprep.subr.bf16.mxu0 %v1375_v0 }
 0x1da   :  { %1054 = vmatpush3.bf16.msra.mxu0 %v1468_v9 }
 0x1db   :  { %1055 = vmatprep.subr.bf16.mxu0 %v1375_v0 }
 0x1de   :  { %1056 = vmatpush3.bf16.msra.mxu0 %v1474_v10 }
 0x1df   :  { %1057 = vmatprep.subr.bf16.mxu0 %v1375_v0 }
 0x1e2   :  { %1058 = vmatpush3.bf16.msra.mxu0 %v1480_v11 }
 0x1e3   :  { %1083 = vmatprep.subr.bf16.mxu0 %v1375_v0 }
 0x285   :  { %v308_v56 = vpop.f32.mrf.mxu0 }
 0x286   :  { %v318_v57 = vadd.f32 %v317_v26, %v308_v56 }
 0x287   :  { %v1021_v58 = vpop.f32.mrf.mxu0 }
 0x288   :  { %v875_v59 = vmul.f32 -1.442695, %v318_v57  ;;  %1201 = vtanh.f32 %v318_v57 }
 0x289   :  { %v311_v60 = vpop.f32.mrf.mxu0 }
 0x28a   :  { %1203 = vpow2.f32 %v875_v59 }
 0x28b   :  { %v1022_v61 = vpop.f32.mrf.mxu0 }
 0x295   :  { %v1202_v62 = vpop.eup %1201 }
 0x296   :  { %328 = vrot.lane.b32.xlu0 %v1202_v62, %s1370_s24 }
 0x297   :  { %v1204_v63 = vpop.eup %1203 }
 0x298   :  { %v322_v3 = vadd.f32 1.0, %v1204_v63 }
 0x29a   :  { %1205 = vrcp.f32 %v322_v3 }
 0x2a7   :  { %v1206_v5 = vpop.eup %1205 }
 0x2a8   :  { %326 = vrot.lane.b32.xlu1 %v1206_v5, %s1379_s17 }
 0x2ac   :  { %330 = vrot.lane.b32.xlu1 %v1206_v5, %s1378_s2 }
 0x308   :  { %v329_v7 = vpop.permute.xlu0 %328 }
 0x309   :  { %v333_v13 = vmul.f32 %v1206_v5, %v329_v7 }
 0x31a   :  { %v327_v12 = vpop.permute.xlu1 %326 }
 0x31b   :  { %v332_v14 = vmul.f32 %v327_v12, %v270_v51 }
 0x31d   :  { %v334_v15 = vadd.f32 %v333_v13, %v332_v14 }
 0x31e   :  { %v331_v17 = vpop.permute.xlu1 %330 }
 0x31f   :  { %1207 = vtanh.f32 %v334_v15 }
 0x32c   :  { %v1208_v16 = vpop.eup %1207 }
 0x32d   :  { %v336_v18 = vmul.f32 %v1208_v16, %v331_v17 }
 0x32f   :  { %v337_v19 = vpack.c.bf16 %v336_v18, %v336_v18 }
 0x331   :  { %1040 = vmatmul.mubr.bf16.vlgmr.msra.gmra.mxu1 %v337_v19 }
 0x332   :  { %1064 = vmatpush3.bf16.msra.mxu1 %v1443_v1  ;;  %1079 = vmatprep.mubr.msk.bf16.mxu1 %vm1376_vm0, %v1375_v0 }
 0x333   :  { %1065 = vmatprep.subr.bf16.mxu1 %v1375_v0 }
 0x336   :  { %1066 = vmatpush3.bf16.msra.mxu1 %v1446_v2 }
 0x337   :  { %1067 = vmatprep.subr.bf16.mxu1 %v1375_v0 }
 0x33a   :  { %1068 = vmatpush3.bf16.msra.mxu1 %v1449_v4 }
 0x33b   :  { %1069 = vmatprep.subr.bf16.mxu1 %v1375_v0 }
 0x33e   :  { %1070 = vmatpush3.bf16.msra.mxu1 %v1455_v6 }
 0x33f   :  { %1071 = vmatprep.subr.bf16.mxu1 %v1375_v0 }
 0x342   :  { %1072 = vmatpush3.bf16.msra.mxu1 %v1459_v8 }
 0x343   :  { %1073 = vmatprep.subr.bf16.mxu1 %v1375_v0 }
 0x346   :  { %1074 = vmatpush3.bf16.msra.mxu1 %v1468_v9 }
 0x347   :  { %1075 = vmatprep.subr.bf16.mxu1 %v1375_v0 }
 0x34a   :  { %1076 = vmatpush3.bf16.msra.mxu1 %v1474_v10 }
 0x34b   :  { %1077 = vmatprep.subr.bf16.mxu1 %v1375_v0 }
 0x34e   :  { %1078 = vmatpush3.bf16.msra.mxu1 %v1480_v11 }
 0x34f   :  { %1103 = vmatprep.subr.bf16.mxu1 %v1375_v0 }
 0x3f1   :  { %v372_v20 = vpop.f32.mrf.mxu1 }
 0x3f2   :  { %v382_v21 = vadd.f32 %v1516_v27, %v372_v20 }
 0x3f3   :  { %v1041_v22 = vpop.f32.mrf.mxu1 }
 0x3f4   :  { %v876_v23 = vmul.f32 -1.442695, %v382_v21  ;;  %1209 = vtanh.f32 %v382_v21 }
 0x3f5   :  { %v375_v24 = vpop.f32.mrf.mxu1 }
 0x3f6   :  { %1211 = vpow2.f32 %v876_v23 }
 0x3f7   :  { %v1042_v25 = vpop.f32.mrf.mxu1 }
 0x401   :  { %v1210_v26 = vpop.eup %1209 }
 0x402   :  { %392 = vrot.lane.b32.xlu1 %v1210_v26, %s1370_s24 }
 0x403   :  { %v1212_v29 = vpop.eup %1211 }
 0x404   :  { %v386_v34 = vadd.f32 1.0, %v1212_v29 }
 0x406   :  { %1213 = vrcp.f32 %v386_v34 }
 0x413   :  { %v1214_v35 = vpop.eup %1213 }
 0x414   :  { %390 = vrot.lane.b32.xlu0 %v1214_v35, %s1379_s17 }
 0x418   :  { %394 = vrot.lane.b32.xlu0 %v1214_v35, %s1378_s2 }
 0x474   :  { %v393_v36 = vpop.permute.xlu1 %392 }
 0x475   :  { %v397_v27 = vmul.f32 %v1214_v35, %v393_v36 }
 0x486   :  { %v391_v37 = vpop.permute.xlu0 %390 }
 0x487   :  { %v396_v38 = vmul.f32 %v391_v37, %v334_v15 }
 0x489   :  { %v398_v39 = vadd.f32 %v397_v27, %v396_v38 }
 0x48a   :  { %v395_v41 = vpop.permute.xlu0 %394 }
 0x48b   :  { %1215 = vtanh.f32 %v398_v39 }
 0x498   :  { %v1216_v40 = vpop.eup %1215 }
 0x499   :  { %v400_v42 = vmul.f32 %v1216_v40, %v395_v41 }
 0x49b   :  { %v401_v43 = vpack.c.bf16 %v400_v42, %v400_v42 }
 0x49d   :  { %1060 = vmatmul.mubr.bf16.vlgmr.msra.gmra.mxu0 %v401_v43 }
 0x49e   :  { %1084 = vmatpush3.bf16.msra.mxu0 %v1443_v1  ;;  %1099 = vmatprep.mubr.msk.bf16.mxu0 %vm1376_vm0, %v1375_v0 }
 0x49f   :  { %1085 = vmatprep.subr.bf16.mxu0 %v1375_v0 }
 0x4a2   :  { %1086 = vmatpush3.bf16.msra.mxu0 %v1446_v2 }
 0x4a3   :  { %1087 = vmatprep.subr.bf16.mxu0 %v1375_v0 }
 0x4a6   :  { %1088 = vmatpush3.bf16.msra.mxu0 %v1449_v4 }
 0x4a7   :  { %1089 = vmatprep.subr.bf16.mxu0 %v1375_v0 }
 0x4aa   :  { %1090 = vmatpush3.bf16.msra.mxu0 %v1455_v6 }
 0x4ab   :  { %1091 = vmatprep.subr.bf16.mxu0 %v1375_v0 }
 0x4ae   :  { %1092 = vmatpush3.bf16.msra.mxu0 %v1459_v8 }
 0x4af   :  { %1093 = vmatprep.subr.bf16.mxu0 %v1375_v0 }
 0x4b2   :  { %1094 = vmatpush3.bf16.msra.mxu0 %v1468_v9 }
 0x4b3   :  { %1095 = vmatprep.subr.bf16.mxu0 %v1375_v0 }
 0x4b6   :  { %1096 = vmatpush3.bf16.msra.mxu0 %v1474_v10 }
 0x4b7   :  { %1097 = vmatprep.subr.bf16.mxu0 %v1375_v0 }
 0x4ba   :  { %1098 = vmatpush3.bf16.msra.mxu0 %v1480_v11 }
 0x4bb   :  { %1123 = vmatprep.subr.bf16.mxu0 %v1375_v0 }
 0x55d   :  { %v436_v44 = vpop.f32.mrf.mxu0 }
 0x55e   :  { %v446_v45 = vadd.f32 %v1518_v28, %v436_v44 }
 0x55f   :  { %v1061_v46 = vpop.f32.mrf.mxu0 }
 0x560   :  { %v877_v47 = vmul.f32 -1.442695, %v446_v45  ;;  %1217 = vtanh.f32 %v446_v45 }
 0x561   :  { %v439_v48 = vpop.f32.mrf.mxu0 }
 0x562   :  { %1219 = vpow2.f32 %v877_v47 }
 0x563   :  { %v1062_v49 = vpop.f32.mrf.mxu0 }
 0x56d   :  { %v1218_v50 = vpop.eup %1217 }
 0x56e   :  { %456 = vrot.lane.b32.xlu0 %v1218_v50, %s1370_s24 }
 0x56f   :  { %v1220_v51 = vpop.eup %1219 }
 0x570   :  { %v450_v52 = vadd.f32 1.0, %v1220_v51 }
 0x572   :  { %1221 = vrcp.f32 %v450_v52 }
 0x57f   :  { %v1222_v53 = vpop.eup %1221 }
 0x580   :  { %454 = vrot.lane.b32.xlu1 %v1222_v53, %s1379_s17 }
 0x584   :  { %458 = vrot.lane.b32.xlu1 %v1222_v53, %s1378_s2 }
 0x5e0   :  { %v457_v54 = vpop.permute.xlu0 %456 }
 0x5e1   :  { %v461_v28 = vmul.f32 %v1222_v53, %v457_v54 }
 0x5f2   :  { %v455_v55 = vpop.permute.xlu1 %454 }
 0x5f3   :  { %v460_v56 = vmul.f32 %v455_v55, %v398_v39 }
 0x5f5   :  { %v462_v57 = vadd.f32 %v461_v28, %v460_v56 }
 0x5f6   :  { %v459_v59 = vpop.permute.xlu1 %458 }
 0x5f7   :  { %1223 = vtanh.f32 %v462_v57 }
 0x604   :  { %v1224_v58 = vpop.eup %1223 }
 0x605   :  { %v464_v60 = vmul.f32 %v1224_v58, %v459_v59 }
 0x607   :  { %v465_v61 = vpack.c.bf16 %v464_v60, %v464_v60 }
 0x609   :  { %1080 = vmatmul.mubr.bf16.vlgmr.msra.gmra.mxu1 %v465_v61 }
 0x60a   :  { %1104 = vmatpush3.bf16.msra.mxu1 %v1443_v1  ;;  %1119 = vmatprep.mubr.msk.bf16.mxu1 %vm1376_vm0, %v1375_v0 }
 0x60b   :  { %1105 = vmatprep.subr.bf16.mxu1 %v1375_v0 }
 0x60e   :  { %1106 = vmatpush3.bf16.msra.mxu1 %v1446_v2 }
 0x60f   :  { %1107 = vmatprep.subr.bf16.mxu1 %v1375_v0 }
 0x612   :  { %1108 = vmatpush3.bf16.msra.mxu1 %v1449_v4 }
 0x613   :  { %1109 = vmatprep.subr.bf16.mxu1 %v1375_v0 }
 0x616   :  { %1110 = vmatpush3.bf16.msra.mxu1 %v1455_v6 }
 0x617   :  { %1111 = vmatprep.subr.bf16.mxu1 %v1375_v0 }
 0x61a   :  { %1112 = vmatpush3.bf16.msra.mxu1 %v1459_v8 }
 0x61b   :  { %1113 = vmatprep.subr.bf16.mxu1 %v1375_v0 }
 0x61e   :  { %1114 = vmatpush3.bf16.msra.mxu1 %v1468_v9 }
 0x61f   :  { %1115 = vmatprep.subr.bf16.mxu1 %v1375_v0 }
 0x622   :  { %1116 = vmatpush3.bf16.msra.mxu1 %v1474_v10 }
 0x623   :  { %1117 = vmatprep.subr.bf16.mxu1 %v1375_v0 }
 0x626   :  { %1118 = vmatpush3.bf16.msra.mxu1 %v1480_v11 }
 0x627   :  { %1143 = vmatprep.subr.bf16.mxu1 %v1375_v0 }
 0x6c9   :  { %v500_v62 = vpop.f32.mrf.mxu1 }
 0x6ca   :  { %v510_v63 = vadd.f32 %v1520_v30, %v500_v62  ;;  %v1185_v62 = vld [vmem:[#allocation8 + $0x38] sm:$0xff]  }
 0x6cb   :  { %v1081_v3 = vpop.f32.mrf.mxu1 }
 0x6cc   :  { %v878_v5 = vmul.f32 -1.442695, %v510_v63  ;;  %1225 = vtanh.f32 %v510_v63  ;;  %v1186_v3 = vld [vmem:[#allocation8 + $0x30] sm:$0xff]  }
 0x6cd   :  { %v503_v7 = vpop.f32.mrf.mxu1 }
 0x6ce   :  { %1227 = vpow2.f32 %v878_v5  ;;  %v1187_v5 = vld [vmem:[#allocation8 + $0x28] sm:$0xff]  }
 0x6cf   :  { %v1082_v12 = vpop.f32.mrf.mxu1 }
 0x6d9   :  { %v1226_v13 = vpop.eup %1225 }
 0x6da   :  { %520 = vrot.lane.b32.xlu1 %v1226_v13, %s1370_s24  ;;  %v1188_v13 = vld [vmem:[#allocation8 + $0x20] sm:$0xff]  }
 0x6db   :  { %v1228_v14 = vpop.eup %1227 }
 0x6dc   :  { %v514_v15 = vadd.f32 1.0, %v1228_v14  ;;  %v1189_v14 = vld [vmem:[#allocation8 + $0x18] sm:$0xff]  }
 0x6de   :  { %1229 = vrcp.f32 %v514_v15  ;;  %v1190_v15 = vld [vmem:[#allocation8 + $0x10] sm:$0xff]  }
 0x6eb   :  { %v1230_v16 = vpop.eup %1229 }
 0x6ec   :  { %518 = vrot.lane.b32.xlu0 %v1230_v16, %s1379_s17 }
 0x6f0   :  { %522 = vrot.lane.b32.xlu0 %v1230_v16, %s1378_s2 }
 0x74c   :  { %v521_v17 = vpop.permute.xlu1 %520 }
 0x74d   :  { %v525_v30 = vmul.f32 %v1230_v16, %v521_v17  ;;  %v1191_v17 = vld [vmem:[#allocation8 + $0x8] sm:$0xff]  }
 0x75e   :  { %v519_v18 = vpop.permute.xlu0 %518 }
 0x75f   :  { %v524_v19 = vmul.f32 %v519_v18, %v462_v57  ;;  %v1192_v18 = vld [vmem:[#allocation8] sm:$0xff]  }
 0x761   :  { %v526_v20 = vadd.f32 %v525_v30, %v524_v19 }
 0x762   :  { %v523_v22 = vpop.permute.xlu0 %522 }
 0x763   :  { %1231 = vtanh.f32 %v526_v20 }
 0x770   :  { %v1232_v21 = vpop.eup %1231 }
 0x771   :  { %v528_v23 = vmul.f32 %v1232_v21, %v523_v22 }
 0x773   :  { %v529_v24 = vpack.c.bf16 %v528_v23, %v528_v23 }
 0x775   :  { %1100 = vmatmul.mubr.bf16.vlgmr.msra.gmra.mxu0 %v529_v24 }
 0x776   :  { %1124 = vmatpush3.bf16.msra.mxu0 %v1443_v1  ;;  %1139 = vmatprep.mubr.msk.bf16.mxu0 %vm1376_vm0, %v1375_v0 }
 0x777   :  { %1125 = vmatprep.subr.bf16.mxu0 %v1375_v0 }
 0x77a   :  { %1126 = vmatpush3.bf16.msra.mxu0 %v1446_v2 }
 0x77b   :  { %1127 = vmatprep.subr.bf16.mxu0 %v1375_v0 }
 0x77e   :  { %1128 = vmatpush3.bf16.msra.mxu0 %v1449_v4 }
 0x77f   :  { %1129 = vmatprep.subr.bf16.mxu0 %v1375_v0 }
 0x782   :  { %1130 = vmatpush3.bf16.msra.mxu0 %v1455_v6 }
 0x783   :  { %1131 = vmatprep.subr.bf16.mxu0 %v1375_v0 }
 0x786   :  { %1132 = vmatpush3.bf16.msra.mxu0 %v1459_v8 }
 0x787   :  { %1133 = vmatprep.subr.bf16.mxu0 %v1375_v0 }
 0x78a   :  { %1134 = vmatpush3.bf16.msra.mxu0 %v1468_v9 }
 0x78b   :  { %1135 = vmatprep.subr.bf16.mxu0 %v1375_v0 }
 0x78e   :  { %1136 = vmatpush3.bf16.msra.mxu0 %v1474_v10 }
 0x78f   :  { %1137 = vmatprep.subr.bf16.mxu0 %v1375_v0 }
 0x792   :  { %1138 = vmatpush3.bf16.msra.mxu0 %v1480_v11 }
 0x835   :  { %v564_v1 = vpop.f32.mrf.mxu0 }
 0x836   :  { %v574_v2 = vadd.f32 %v1522_v31, %v564_v1 }
 0x837   :  { %v1101_v4 = vpop.f32.mrf.mxu0 }
 0x838   :  { %v879_v6 = vmul.f32 -1.442695, %v574_v2  ;;  %1233 = vtanh.f32 %v574_v2  ;;  %v882_v4 = vld [vmem:[%s1667_s5] ss:$0 sm:$0xff]  ;;  %s1341_s5 = scalar_lea.vmem %s852_s21, 128 }
 0x839   :  { %v567_v25 = vpop.f32.mrf.mxu0  ;;  %p1342_p6 = scmp.ne.s32.totalorder %s852_s21, %s1341_s5  ;;  %p1347_p8 = scmp.lt.s32.totalorder %s1341_s5, %s1341_s5 }
 0x83a   :  { %1235 = vpow2.f32 %v879_v6 }
 0x83b   :  { %v1102_v8 = vpop.f32.mrf.mxu0  ;;  %p1348_p9 = por %p1347_p8, %p1346_p7 }
 0x83d   :  { %p1349_p10 = pnand %p1348_p9, %p1342_p6 }
 0x845   :  { %v1234_v26 = vpop.eup %1233 }
 0x846   :  { %584 = vrot.lane.b32.xlu0 %v1234_v26, %s1370_s24 }
 0x847   :  { %v1236_v9 = vpop.eup %1235 }
 0x848   :  { %v578_v29 = vadd.f32 1.0, %v1236_v9 }
 0x84a   :  { %1237 = vrcp.f32 %v578_v29 }
 0x857   :  { %v1238_v10 = vpop.eup %1237 }
 0x858   :  { %582 = vrot.lane.b32.xlu1 %v1238_v10, %s1379_s17 }
 0x85c   :  { %586 = vrot.lane.b32.xlu1 %v1238_v10, %s1378_s2 }
 0x8b8   :  { %v585_v11 = vpop.permute.xlu0 %584 }
 0x8b9   :  { %v589_v31 = vmul.f32 %v1238_v10, %v585_v11 }
 0x8ca   :  { %v583_v34 = vpop.permute.xlu1 %582 }
 0x8cb   :  { %v588_v35 = vmul.f32 %v583_v34, %v526_v20 }
 0x8cd   :  { %v590_v36 = vadd.f32 %v589_v31, %v588_v35 }
 0x8ce   :  { %v587_v27 = vpop.permute.xlu1 %586 }
 0x8cf   :  { %1239 = vtanh.f32 %v590_v36 }
 0x8dc   :  { %v1240_v37 = vpop.eup %1239 }
 0x8dd   :  { %v592_v38 = vmul.f32 %v1240_v37, %v587_v27 }
 0x8df   :  { %v593_v39 = vpack.c.bf16 %v592_v38, %v592_v38 }
 0x8e1   :  { %1120 = vmatmul.mubr.bf16.vlgmr.msra.gmra.mxu1 %v593_v39 }
 0x8e2   :  { %1159 = vmatprep.mubr.msk.bf16.mxu1 %vm1376_vm0, %v1375_v0  ;;  %1144 = vmatpush3.bf16.msra.mxu1 %v1185_v62 }
 0x8e3   :  { %1145 = vmatprep.subr.bf16.mxu1 %v1375_v0 }
 0x8e6   :  { %1146 = vmatpush3.bf16.msra.mxu1 %v1186_v3 }
 0x8e7   :  { %1147 = vmatprep.subr.bf16.mxu1 %v1375_v0 }
 0x8ea   :  { %1148 = vmatpush3.bf16.msra.mxu1 %v1187_v5 }
 0x8eb   :  { %1149 = vmatprep.subr.bf16.mxu1 %v1375_v0 }
 0x8ee   :  { %1150 = vmatpush3.bf16.msra.mxu1 %v1188_v13 }
 0x8ef   :  { %1151 = vmatprep.subr.bf16.mxu1 %v1375_v0 }
 0x8f2   :  { %1152 = vmatpush3.bf16.msra.mxu1 %v1189_v14 }
 0x8f3   :  { %1153 = vmatprep.subr.bf16.mxu1 %v1375_v0 }
 0x8f6   :  { %1154 = vmatpush3.bf16.msra.mxu1 %v1190_v15 }
 0x8f7   :  { %1155 = vmatprep.subr.bf16.mxu1 %v1375_v0 }
 0x8fa   :  { %1156 = vmatpush3.bf16.msra.mxu1 %v1191_v17 }
 0x8fb   :  { %1157 = vmatprep.subr.bf16.mxu1 %v1375_v0 }
 0x8fe   :  { %1158 = vmatpush3.bf16.msra.mxu1 %v1192_v18 }
 0x9a1   :  { %v628_v40 = vpop.f32.mrf.mxu1 }
 0x9a2   :  { %v638_v41 = vadd.f32 %v1524_v32, %v628_v40 }
 0x9a3   :  { %v1121_v42 = vpop.f32.mrf.mxu1 }
 0x9a4   :  { %v880_v43 = vmul.f32 -1.442695, %v638_v41  ;;  %1241 = vtanh.f32 %v638_v41 }
 0x9a5   :  { %v631_v44 = vpop.f32.mrf.mxu1 }
 0x9a6   :  { %1243 = vpow2.f32 %v880_v43 }
 0x9a7   :  { %v1122_v45 = vpop.f32.mrf.mxu1 }
 0x9b1   :  { %v1242_v46 = vpop.eup %1241 }
 0x9b2   :  { %648 = vrot.lane.b32.xlu1 %v1242_v46, %s1370_s24 }
 0x9b3   :  { %v1244_v47 = vpop.eup %1243 }
 0x9b4   :  { %v642_v48 = vadd.f32 1.0, %v1244_v47 }
 0x9b6   :  { %1245 = vrcp.f32 %v642_v48 }
 0x9c3   :  { %v1246_v49 = vpop.eup %1245 }
 0x9c4   :  { %646 = vrot.lane.b32.xlu0 %v1246_v49, %s1379_s17 }
 0x9c8   :  { %650 = vrot.lane.b32.xlu0 %v1246_v49, %s1378_s2 }
 0xa24   :  { %v649_v50 = vpop.permute.xlu1 %648 }
 0xa25   :  { %v653_v32 = vmul.f32 %v1246_v49, %v649_v50 }
 0xa36   :  { %v647_v51 = vpop.permute.xlu0 %646 }
 0xa37   :  { %v652_v52 = vmul.f32 %v647_v51, %v590_v36 }
 0xa39   :  { %v654_v53 = vadd.f32 %v653_v32, %v652_v52 }
 0xa3a   :  { %v651_v55 = vpop.permute.xlu0 %650 }
 0xa3b   :  { %1247 = vtanh.f32 %v654_v53 }
 0xa48   :  { %v1248_v54 = vpop.eup %1247 }
 0xa49   :  { %v656_v28 = vmul.f32 %v1248_v54, %v651_v55 }
 0xa4b   :  { %v657_v56 = vpack.c.bf16 %v656_v28, %v656_v28 }
 0xa4d   :  { %1140 = vmatmul.mubr.bf16.vlgmr.msra.gmra.mxu0 %v657_v56 }
 0xb0d   :  { %v692_v57 = vpop.f32.mrf.mxu0 }
 0xb0e   :  { %v702_v58 = vadd.f32 %v1526_v33, %v692_v57 }
 0xb0f   :  { %v1141_v59 = vpop.f32.mrf.mxu0 }
 0xb10   :  { %v881_v60 = vmul.f32 -1.442695, %v702_v58  ;;  %1249 = vtanh.f32 %v702_v58 }
 0xb11   :  { %v695_v61 = vpop.f32.mrf.mxu0 }
 0xb12   :  { %1251 = vpow2.f32 %v881_v60 }
 0xb13   :  { %v1142_v63 = vpop.f32.mrf.mxu0 }
 0xb1d   :  { %v1250_v7 = vpop.eup %1249 }
 0xb1e   :  { %712 = vrot.lane.b32.xlu0 %v1250_v7, %s1370_s24 }
 0xb1f   :  { %v1252_v33 = vpop.eup %1251 }
 0xb20   :  { %v706_v12 = vadd.f32 1.0, %v1252_v33 }
 0xb22   :  { %1253 = vrcp.f32 %v706_v12 }
 0xb2f   :  { %v1254_v16 = vpop.eup %1253 }
 0xb30   :  { %710 = vrot.lane.b32.xlu1 %v1254_v16, %s1379_s17 }
 0xb34   :  { %714 = vrot.lane.b32.xlu1 %v1254_v16, %s1378_s2 }
 0xb90   :  { %v713_v30 = vpop.permute.xlu0 %712 }
 0xb91   :  { %v717_v20 = vmul.f32 %v1254_v16, %v713_v30 }
 0xba2   :  { %v711_v19 = vpop.permute.xlu1 %710 }
 0xba3   :  { %v716_v21 = vmul.f32 %v711_v19, %v654_v53 }
 0xba5   :  { %v718_v22 = vadd.f32 %v717_v20, %v716_v21 }
 0xba6   :  { %v715_v24 = vpop.permute.xlu1 %714 }
 0xba7   :  { %1255 = vtanh.f32 %v718_v22 }
 0xbb4   :  { %v1256_v23 = vpop.eup %1255 }
 0xbb5   :  { %v720_v1 = vmul.f32 %v1256_v23, %v715_v24 }
 0xbb7   :  { %v721_v2 = vpack.c.bf16 %v720_v1, %v720_v1 }
 0xbb9   :  { %1160 = vmatmul.mubr.bf16.vlgmr.msra.gmra.mxu1 %v721_v2 }
 0xc79   :  { %v827_v0 = vpop.f32.mrf.mxu1 }
 0xc7a   :  { %v828_v6 = vadd.f32 %v882_v4, %v827_v0 }
 0xc7b   :  { %v1161_v25 = vpop.f32.mrf.mxu1 }
 0xc7c   :  { %833 = vmax.xlane.f32.xlu0 %v828_v6 }
 0xc7d   :  { %v830_v8 = vpop.f32.mrf.mxu1 }
 0xc7f   :  { %v1162_v26 = vpop.f32.mrf.mxu1 }
 0xd05   :  { %v834_v9 = vpop.xlane.xlu0 %833 }
 0xd06   :  { %v835_v29 = vsub.f32 %v828_v6, %v834_v9 }
 0xd08   :  { %v836_v10 = vmul.f32 1.442695, %v835_v29 }
 0xd0a   :  { %1257 = vpow2.f32 %v836_v10 }
 0xd17   :  { %v1258_v11 = vpop.eup %1257 }
 0xd18   :  { %838 = vadd.xlane.f32.xlu1 %v1258_v11 }
 0xda1   :  { %v839_v34 = vpop.xlane.xlu1 %838 }
 0xda2   :  { %1259 = vlog2.f32 %v839_v34 }
 0xdaf   :  { %v1260_v31 = vpop.eup %1259 }
 0xdb0   :  { %v841_v35 = vmul.f32 0.6931472, %v1260_v31 }
 0xdb2   :  { %v842_v36 = vadd.f32 %v841_v35, %v834_v9 }
 0xdb4   :  { %v843_v37 = vsub.f32 %v828_v6, %v842_v36 }
 0xdb6   :  { %844 = vst [vmem:[#allocation10] sm:$0xff] %v843_v37 }
 0xdb7   :  { %1352 = shalt.err (!%p1349_p10)
}
 0xdb8   :  { %854 = dma.vmem_to_hbm [thread:$0]  %s852_s21, 128, %s1668_s6, [#allocation4]  }
 0xdb9   :  { %1367 = dma.done.wait [#allocation4], 128  }
 0xdba   :  { %1368 = vsyncadd [#allocation4], 4294967168 }
 0xdbb   :  { %858 = vsyncpa [#allocation3], 1 }
 0xdbc   :  { %859 = vsyncpa [#allocation6], 1 }
 0xdbd   :  { %860 = vsyncpa [#allocation9], 1 }
 0xdbe   :  { %861 = vsyncpa [#allocation4], 1 }

</bundles_post_ra>
